<compile_context>
chip_gen: v5e
topology: v5e:2x2
jax: 0.10.0
libtpu: 0.0.40
codegen_flags: <defaults>
</compile_context>

<pallas_src>
import functools
import math

import jax
import jax.numpy as jnp
from jax.experimental import pallas as pl
from jax.experimental.pallas import tpu as pltpu


def layer_norm_kernel(x_ref, a_ref, b_ref, o_ref, *, eps, inv_nm1):
    # One fused pass over a VMEM-resident (block_rows, d_model) tile.
    x = x_ref[...].astype(jnp.float32)                 # upcast in-kernel only
    mean = jnp.mean(x, axis=-1, keepdims=True)         # (block_rows, 1)
    xc = x - mean
    # torch.Tensor.std is unbiased (divide by N-1); multiply by precomputed const.
    var = jnp.sum(xc * xc, axis=-1, keepdims=True) * inv_nm1
    std = jnp.sqrt(var)
    # eps is added to std (PyTorch reference), then reciprocal on the EUP slot.
    inv = pl.reciprocal(std + eps, approx=False)       # approx=True OK at looser tol
    a = a_ref[...].astype(jnp.float32)
    b = b_ref[...].astype(jnp.float32)
    o_ref[...] = (a * (xc * inv) + b).astype(o_ref.dtype)


def _round_up(n, m):
    return ((n + m - 1) // m) * m


def _choose_block_rows(rows, d, in_itemsize, out_itemsize):
    """Biggest row tile that amortizes per-step overhead but fits a v7x-safe VMEM budget."""
    # Sublane multiple: 8 for 32-bit, 16 for 16-bit, 32 for 8-bit dtypes.
    sub = 8 * max(1, 4 // min(in_itemsize, out_itemsize))
    # Target ~2 MiB input tiles (vs 128 KiB before): DMA time dominates the
    # ~0.35 us per-grid-step overhead, pushing a mem-bound kernel toward roofline.
    target_tile_bytes = 2 * 1024 * 1024
    br = max(sub, (target_tile_bytes // (d * in_itemsize)) // sub * sub)
    # VMEM cap: 2x-buffered input + 2x-buffered output + ~2 f32 working copies
    # per row, kept under ~20 MiB (v7x: 64 MiB physical / 32 MiB scoped default).
    vmem_budget = 20 * 1024 * 1024
    bytes_per_row = d * (2 * in_itemsize + 2 * out_itemsize + 2 * 4)
    br = min(br, max(sub, (vmem_budget // bytes_per_row) // sub * sub))
    # Keep >= ~4 grid steps when there is enough work so both v7x TensorCores
    # get tiles and the input/output DMA pipeline can overlap with compute.
    min_steps = 4
    if rows >= min_steps * sub:
        br = min(br, _round_up(pl.cdiv(rows, min_steps), sub))
    # Never larger than the (sublane-rounded) row count.
    br = min(br, _round_up(rows, sub))
    return max(br, sub)


def layer_norm(x, a_2, b_2, eps=1e-6, block_rows=None):
    """Pallas LayerNorm over the last axis of `x` (arbitrary leading dims).

    HBM I/O stays in x.dtype; statistics are computed in float32 inside the
    kernel. Output dtype == input dtype.
    """
    *lead, d = x.shape
    rows = math.prod(lead) if lead else 1
    x2 = x.reshape(rows, d)                      # no dtype cast in the wrapper
    a2 = a_2.reshape(1, d)
    b2 = b_2.reshape(1, d)

    in_isz = jnp.dtype(x2.dtype).itemsize
    out_isz = in_isz
    br = block_rows or _choose_block_rows(rows, d, in_isz, out_isz)
    grid = (pl.cdiv(rows, br),)                  # ragged last block, no pad/slice

    # d == 1 is degenerate for an unbiased std (PyTorch returns NaN); mirror it.
    inv_nm1 = 1.0 / (d - 1) if d > 1 else float("nan")
    kernel = functools.partial(layer_norm_kernel, eps=float(eps), inv_nm1=inv_nm1)

    out = pl.pallas_call(
        kernel,
        out_shape=jax.ShapeDtypeStruct((rows, d), x2.dtype),
        grid=grid,
        in_specs=[
            pl.BlockSpec((br, d), lambda i: (i, 0)),   # x row tile (lane-dense last dim)
            pl.BlockSpec((1, d), lambda i: (0, 0)),    # a_2 (scale), resident
            pl.BlockSpec((1, d), lambda i: (0, 0)),    # b_2 (shift), resident
        ],
        out_specs=pl.BlockSpec((br, d), lambda i: (i, 0)),
        compiler_params=pltpu.CompilerParams(
            dimension_semantics=("parallel",),
            vmem_limit_bytes=32 * 1024 * 1024,   # above v5e's 16 MiB scoped default
        ),
    )(x2, a2, b2)

    return out.reshape(*lead, d) if lead else out.reshape(d)


def reference(x, a_2, b_2, eps=1e-6):
    """Pure-JAX replica of the PyTorch forward (unbiased std, eps added to std)."""
    x = x.astype(jnp.float32)
    mean = jnp.mean(x, axis=-1, keepdims=True)
    std = jnp.std(x, axis=-1, keepdims=True, ddof=1)
    return a_2 * (x - mean) / (std + eps) + b_2


if __name__ == "__main__":
    B, S, D = 2, 8, 128          # batch, seq, d_model (lane-aligned feature dim)

    key = jax.random.PRNGKey(0)
    k_x, k_a, k_b = jax.random.split(key, 3)
    x = jax.random.normal(k_x, (B, S, D), dtype=jnp.float32)
    # Module initializes a_2=ones, b_2=zeros; perturb so the test is nontrivial.
    a_2 = 1.0 + 0.1 * jax.random.normal(k_a, (D,), dtype=jnp.float32)
    b_2 = 0.1 * jax.random.normal(k_b, (D,), dtype=jnp.float32)

    # float32 path, tight tolerance.
    out = jax.block_until_ready(layer_norm(x, a_2, b_2))
    ref = reference(x, a_2, b_2)
    assert out.shape == (B, S, D) and out.dtype == jnp.float32
    assert jnp.allclose(out, ref, atol=1e-5, rtol=1e-5), (
        float(jnp.max(jnp.abs(out - ref))))

    # bf16 path: HBM I/O stays bf16, stats in f32 inside the kernel.
    x_bf16 = x.astype(jnp.bfloat16)
    out_bf16 = jax.block_until_ready(layer_norm(x_bf16, a_2, b_2))
    ref_bf16 = reference(x_bf16.astype(jnp.float32), a_2, b_2)
    assert out_bf16.dtype == jnp.bfloat16
    assert jnp.allclose(out_bf16.astype(jnp.float32), ref_bf16, atol=5e-2, rtol=5e-2)

    print("KERNEL_OK")
</pallas_src>

<mosaic_0001>
module attributes {stable_mosaic.version = 11 : i64} {
  func.func @layer_norm_kernel(%arg0: i32, %arg1: memref<16x128xf32, #tpu.memory_space<vmem>>, %arg2: memref<1x128xf32, #tpu.memory_space<vmem>>, %arg3: memref<1x128xf32, #tpu.memory_space<vmem>>, %arg4: memref<16x128xf32, #tpu.memory_space<vmem>>) attributes {dimension_semantics = [#tpu.dimension_semantics<parallel>], iteration_bounds = array<i64: 1>, scalar_prefetch = 0 : i64, scratch_operands = 0 : i64, tpu.core_type = #tpu.core_type<tc>, window_params = [{transform_indices = @transform_0, window_bounds = array<i64: 16, 128>}, {pipeline_mode = #tpu.pipeline_mode<synchronous>, transform_indices = @transform_1, window_bounds = array<i64: 1, 128>}, {pipeline_mode = #tpu.pipeline_mode<synchronous>, transform_indices = @transform_2, window_bounds = array<i64: 1, 128>}, {transform_indices = @transform_3, window_bounds = array<i64: 16, 128>}]} {
    %c0 = arith.constant 0 : index
    %c0_0 = arith.constant 0 : index
    %0 = vector.load %arg1[%c0, %c0_0] : memref<16x128xf32, #tpu.memory_space<vmem>>, vector<16x128xf32>
    %cst = arith.constant dense<0.000000e+00> : vector<16xf32>
    %1 = vector.multi_reduction <add>, %0, %cst [1] : vector<16x128xf32> to vector<16xf32>
    %2 = vector.shape_cast %1 : vector<16xf32> to vector<16x1xf32>
    %cst_1 = arith.constant 1.280000e+02 : f32
    %3 = vector.broadcast %cst_1 : f32 to vector<16x1xf32>
    %4 = arith.divf %2, %3 : vector<16x1xf32>
    %5 = vector.broadcast %4 : vector<16x1xf32> to vector<16x128xf32>
    %6 = arith.subf %0, %5 : vector<16x128xf32>
    %7 = arith.mulf %6, %6 : vector<16x128xf32>
    %cst_2 = arith.constant dense<0.000000e+00> : vector<16xf32>
    %8 = vector.multi_reduction <add>, %7, %cst_2 [1] : vector<16x128xf32> to vector<16xf32>
    %9 = vector.shape_cast %8 : vector<16xf32> to vector<16x1xf32>
    %cst_3 = arith.constant 0.00787401571 : f32
    %10 = vector.broadcast %cst_3 : f32 to vector<16x1xf32>
    %11 = arith.mulf %9, %10 : vector<16x1xf32>
    %12 = math.sqrt %11 : vector<16x1xf32>
    %cst_4 = arith.constant 9.99999997E-7 : f32
    %13 = vector.broadcast %cst_4 : f32 to vector<16x1xf32>
    %14 = arith.addf %12, %13 : vector<16x1xf32>
    %15 = tpu.reciprocal %14 : vector<16x1xf32> -> vector<16x1xf32>
    %c0_5 = arith.constant 0 : index
    %c0_6 = arith.constant 0 : index
    %16 = vector.load %arg2[%c0_5, %c0_6] : memref<1x128xf32, #tpu.memory_space<vmem>>, vector<1x128xf32>
    %c0_7 = arith.constant 0 : index
    %c0_8 = arith.constant 0 : index
    %17 = vector.load %arg3[%c0_7, %c0_8] : memref<1x128xf32, #tpu.memory_space<vmem>>, vector<1x128xf32>
    %18 = vector.broadcast %15 : vector<16x1xf32> to vector<16x128xf32>
    %19 = arith.mulf %6, %18 : vector<16x128xf32>
    %20 = vector.broadcast %16 : vector<1x128xf32> to vector<16x128xf32>
    %21 = arith.mulf %20, %19 : vector<16x128xf32>
    %22 = vector.broadcast %17 : vector<1x128xf32> to vector<16x128xf32>
    %23 = arith.addf %21, %22 : vector<16x128xf32>
    %c0_9 = arith.constant 0 : index
    %c0_10 = arith.constant 0 : index
    %24 = vector.load %arg4[%c0_9, %c0_10] : memref<16x128xf32, #tpu.memory_space<vmem>>, vector<16x128xf32>
    tpu.vector_store %arg4[%c0_9, %c0_10], %23 {strides = array<i32>} : memref<16x128xf32, #tpu.memory_space<vmem>>, vector<16x128xf32>,
    return
  }
  func.func @transform_0(%arg0: i32) -> (i32, i32) {
    %c0_i32 = arith.constant 0 : i32
    %c0_i32_0 = arith.constant 0 : i32
    return %arg0, %c0_i32 : i32, i32
  }
  func.func @transform_1(%arg0: i32) -> (i32, i32) {
    %c0_i32 = arith.constant 0 : i32
    %c0_i32_0 = arith.constant 0 : i32
    %c0_i32_1 = arith.constant 0 : i32
    return %c0_i32, %c0_i32_0 : i32, i32
  }
  func.func @transform_2(%arg0: i32) -> (i32, i32) {
    %c0_i32 = arith.constant 0 : i32
    %c0_i32_0 = arith.constant 0 : i32
    %c0_i32_1 = arith.constant 0 : i32
    return %c0_i32, %c0_i32_0 : i32, i32
  }
  func.func @transform_3(%arg0: i32) -> (i32, i32) {
    %c0_i32 = arith.constant 0 : i32
    %c0_i32_0 = arith.constant 0 : i32
    return %arg0, %c0_i32 : i32, i32
  }
}

</mosaic_0001>

<bundles_post_ra>
// kernel: tpu_custom_call.1
= control target key start
LH: loop header
LB: loop body
LE: loop exit
PB: predicated region body
PF: predicated region fallthrough
CT: control target
= control target key end

     0   :  { %8 = vsyncpa [#allocation3], 0  ;;  %s305_s0 = inlined_call_operand.hbm [shape: f32[16,128], index: 0, kind: input, shape index: {}]   ;;  %s306_s1 = inlined_call_operand.hbm [shape: f32[1,128], index: 1, kind: input, shape index: {}]   ;;  %s307_s2 = inlined_call_operand.vmem [shape: f32[1,128], index: 2, kind: input, shape index: {}]   ;;  %s308_s3 = inlined_call_operand.hbm [shape: f32[16,128], index: 3, kind: output, shape index: {}]  }
   0x1   :  { %9 = vsyncpa [#allocation6], 0 }
   0x2   :  { %10 = vsyncpa [#allocation4], 0  ;;  %s15_s14 = sshll.u32 %s305_s0, 4  ;;  %s256_s15 = smov [#allocation2]   ;;  %s16_s14 = int_to_ptr.hbm [resolvable:$true] %s15_s14 }
   0x3   :  { %s17_s16 = sshll.u32 %s256_s15, 4  ;;  %s29_s19 = sshll.u32 %s306_s1, 4  ;;  %s18_s16 = int_to_ptr.vmem [resolvable:$true] %s17_s16  ;;  %s30_s19 = int_to_ptr.hbm [resolvable:$true] %s29_s19 }
   0x4   :  { %s257_s20 = smov 128   ;;  %s258_s21 = smov 8  }
   0x5   :  { %23 = dma.hbm_to_vmem [thread:$0]  %s16_s14, 256, %s18_s16, [#allocation3], %s257_s20, %s257_s20, %s258_s21  }
   0x6   :  { %s259_s22 = smov [#allocation5]  }
   0x7   :  { %s31_s23 = sshll.u32 %s259_s22, 4  ;;  %s32_s23 = int_to_ptr.vmem [resolvable:$true] %s31_s23 }
   0x8   :  { %34 = dma.hbm_to_vmem [thread:$0]  %s30_s19, 16, %s32_s23, [#allocation6]  }
   0x9   :  { %250 = dma.done.wait [#allocation3], 256  }
   0xa   :  { %251 = vsyncadd [#allocation3], 4294967040 }
   0xb   :  { %252 = dma.done.wait [#allocation6], 16  }
   0xc   :  { %253 = vsyncadd [#allocation6], 4294967280  ;;  %v45_v0 = vld [vmem:[#allocation2] sm:$0xff]  ;;  %v46_v1 = vld [vmem:[#allocation2 + $0x8] sm:$0xff]  ;;  %v260_v2 = vmov 128.0   ;;  %s261_s24 = smov [#allocation7]  }
   0xd   :  { %47 = vadd.xlane.f32.xlu0 %v45_v0  ;;  %168 = vrcp.f32 %v260_v2  ;;  %v166_v54 = vld [vmem:[#allocation5] ss:$0 sm:$0xff]  ;;  %v167_v58 = vld [vmem:[%s307_s2] ss:$0 sm:$0xff]  ;;  %s144_s25 = sshll.u32 %s261_s24, 4  ;;  %s146_s27 = sshll.u32 %s308_s3, 4  ;;  %s145_s25 = int_to_ptr.vmem [resolvable:$true] %s144_s25  ;;  %s147_s27 = int_to_ptr.hbm [resolvable:$true] %s146_s27 }
  0x13   :  { %v169_v3 = vpop.eup %168 }
  0x14   :  { %v52_v4 = vmul.f32 128.0, %v169_v3  ;;  %vm56_vm0 = vweird.f32 %v169_v3 }
  0x15   :  { %49 = vadd.xlane.f32.xlu0 %v46_v1 }
  0x16   :  { %v53_v5 = vsub.f32 1.0, %v52_v4 }
  0x18   :  { %v54_v6 = vmul.f32 %v169_v3, %v53_v5 }
  0x1a   :  { %v55_v7 = vadd.f32 %v169_v3, %v54_v6 }
  0x1c   :  { %v57_v8 = vsel %vm56_vm0, %v169_v3, %v55_v7 }
  0x80   :  { %v48_v9 = vpop.xlane.xlu0 %47 }
  0x81   :  { %v58_v10 = vmul.f32 %v57_v8, %v48_v9 }
  0x83   :  { %v60_v11 = vsub.f32 %v45_v0, %v58_v10 }
  0x85   :  { %v62_v12 = vmul.f32 %v60_v11, %v60_v11 }
  0x87   :  { %64 = vadd.xlane.f32.xlu1 %v62_v12 }
  0x88   :  { %v50_v13 = vpop.xlane.xlu0 %49 }
  0x89   :  { %v59_v14 = vmul.f32 %v57_v8, %v50_v13 }
  0x8b   :  { %v291_v15 = vsub.f32 %v46_v1, %v59_v14 }
  0x8d   :  { %v63_v16 = vmul.f32 %v291_v15, %v291_v15 }
  0x8f   :  { %66 = vadd.xlane.f32.xlu1 %v63_v16 }
  0xfa   :  { %v65_v17 = vpop.xlane.xlu1 %64 }
  0xfb   :  { %v68_v18 = vmul.f32 0.007874016, %v65_v17 }
  0xfd   :  { %170 = vrsqrt.f32 %v68_v18  ;;  %vm77_vm1 = vcmp.eq.f32.partialorder %v68_v18, inf  ;;  %v80_v31 = vand.u32 2147483648, %v68_v18  ;;  %vm79_vm2 = vcmp.eq.f32.partialorder %v68_v18, 0.0 }
 0x102   :  { %v67_v19 = vpop.xlane.xlu1 %66 }
 0x103   :  { %v171_v20 = vpop.eup %170  ;;  %v69_v21 = vmul.f32 0.007874016, %v67_v19 }
 0x104   :  { %v71_v22 = vmul.f32 %v171_v20, %v68_v18 }
 0x105   :  { %172 = vrsqrt.f32 %v69_v21  ;;  %vm89_vm3 = vcmp.eq.f32.partialorder %v69_v21, inf  ;;  %v92_v39 = vand.u32 2147483648, %v69_v21  ;;  %vm91_vm4 = vcmp.eq.f32.partialorder %v69_v21, 0.0 }
 0x106   :  { %v72_v23 = vmul.f32 %v171_v20, %v71_v22 }
 0x108   :  { %v73_v24 = vmul.f32 0.5, %v72_v23 }
 0x10a   :  { %v74_v25 = vsub.f32 1.5, %v73_v24 }
 0x10b   :  { %v173_v26 = vpop.eup %172 }
 0x10c   :  { %v75_v27 = vmul.f32 %v171_v20, %v74_v25  ;;  %v83_v28 = vmul.f32 %v173_v26, %v69_v21 }
 0x10e   :  { %v76_v29 = vmul.f32 %v75_v27, %v68_v18  ;;  %v84_v30 = vmul.f32 %v173_v26, %v83_v28 }
 0x110   :  { %v78_v32 = vsel %vm77_vm1, %v68_v18, %v76_v29  ;;  %v85_v33 = vmul.f32 0.5, %v84_v30 }
 0x111   :  { %v81_v34 = vsel %vm79_vm2, %v80_v31, %v78_v32 }
 0x112   :  { %v94_v35 = vadd.f32 1e-06, %v81_v34  ;;  %v86_v36 = vsub.f32 1.5, %v85_v33 }
 0x114   :  { %174 = vrcp.f32 %v94_v35  ;;  %v87_v37 = vmul.f32 %v173_v26, %v86_v36  ;;  %v107_v46 = vand.u32 2147483648, %v94_v35  ;;  %v105_v48 = vand.u32 2147483647, %v94_v35 }
 0x115   :  { %vm101_vm6 = vweird.f32 %v94_v35 }
 0x116   :  { %v88_v38 = vmul.f32 %v87_v37, %v69_v21  ;;  %v108_v51 = vor.u32 1.1754944e-38, %v107_v46  ;;  %vm106_vm8 = vcmp.eq.f32.partialorder %v105_v48, 8.507059e+37 }
 0x118   :  { %v90_v40 = vsel %vm89_vm3, %v69_v21, %v88_v38 }
 0x119   :  { %v93_v41 = vsel %vm91_vm4, %v92_v39, %v90_v40 }
 0x11a   :  { %v175_v42 = vpop.eup %174  ;;  %v95_v43 = vadd.f32 1e-06, %v93_v41 }
 0x11b   :  { %v97_v44 = vmul.f32 %v175_v42, %v94_v35  ;;  %vm102_vm5 = vweird.f32 %v175_v42 }
 0x11c   :  { %176 = vrcp.f32 %v95_v43  ;;  %vm103_vm7 = vmor %vm101_vm6, %vm102_vm5  ;;  %v121_v59 = vand.u32 2147483648, %v95_v43  ;;  %v119_v61 = vand.u32 2147483647, %v95_v43  ;;  %vm115_vm10 = vweird.f32 %v95_v43 }
 0x11d   :  { %v98_v45 = vsub.f32 1.0, %v97_v44 }
 0x11e   :  { %v122_v1 = vor.u32 1.1754944e-38, %v121_v59  ;;  %vm120_vm12 = vcmp.eq.f32.partialorder %v119_v61, 8.507059e+37 }
 0x11f   :  { %v99_v47 = vmul.f32 %v175_v42, %v98_v45 }
 0x121   :  { %v100_v49 = vadd.f32 %v175_v42, %v99_v47 }
 0x122   :  { %v177_v50 = vpop.eup %176 }
 0x123   :  { %v104_v52 = vsel %vm103_vm7, %v175_v42, %v100_v49  ;;  %v111_v53 = vmul.f32 %v177_v50, %v95_v43  ;;  %vm116_vm9 = vweird.f32 %v177_v50 }
 0x124   :  { %v109_v55 = vsel %vm106_vm8, %v108_v51, %v104_v52  ;;  %vm117_vm11 = vmor %vm115_vm10, %vm116_vm9 }
 0x125   :  { %v112_v56 = vsub.f32 1.0, %v111_v53  ;;  %v126_v57 = vmul.f32 %v109_v55, %v60_v11 }
 0x127   :  { %v113_v60 = vmul.f32 %v177_v50, %v112_v56  ;;  %v131_v62 = vmul.f32 %v166_v54, %v126_v57 }
 0x129   :  { %v114_v63 = vadd.f32 %v177_v50, %v113_v60  ;;  %v136_v0 = vadd.f32 %v167_v58, %v131_v62 }
 0x12b   :  { %v118_v2 = vsel %vm117_vm11, %v177_v50, %v114_v63  ;;  %138 = vst [vmem:[#allocation7] sm:$0xff] %v136_v0 }
 0x12c   :  { %v123_v3 = vsel %vm120_vm12, %v122_v1, %v118_v2 }
 0x12d   :  { %v127_v4 = vmul.f32 %v123_v3, %v291_v15 }
 0x12f   :  { %v132_v5 = vmul.f32 %v166_v54, %v127_v4 }
 0x131   :  { %v137_v6 = vadd.f32 %v167_v58, %v132_v5 }
 0x133   :  { %139 = vst [vmem:[#allocation7 + $0x8] sm:$0xff] %v137_v6 }
 0x134   :  { %152 = dma.vmem_to_hbm [thread:$0]  %s145_s25, 256, %s147_s27, [#allocation4], %s257_s20, %s257_s20, %s258_s21  }
 0x135   :  { %254 = dma.done.wait [#allocation4], 256  }
 0x136   :  { %255 = vsyncadd [#allocation4], 4294967040 }
 0x137   :  { %157 = vsyncpa [#allocation3], 1 }
 0x138   :  { %158 = vsyncpa [#allocation6], 1 }
 0x139   :  { %159 = vsyncpa [#allocation4], 1 }

</bundles_post_ra>
